<compile_context>
chip_gen: v5e
topology: v5e:2x2
jax: 0.10.0
libtpu: 0.0.40
codegen_flags: <defaults>
</compile_context>

<pallas_src>
import math
import functools

import jax
import jax.numpy as jnp
from jax import lax
from jax.experimental import pallas as pl
from jax.experimental.pallas import tpu as pltpu


def _attn_kernel(seq_len, x_ref, wqkv_ref, bqkv_ref, wo_ref, bo_ref, o_ref):
    # x_ref: (rows, D) bf16 block, rows = TB * seq_len (TB batch elements).
    rows, d = x_ref.shape
    tb = rows // seq_len
    scale = 1.0 / math.sqrt(d)

    x = x_ref[...]                                        # (rows, D) bf16

    # Fused QKV projection: one wide matmul, f32 accumulation, f32 bias add.
    qkv = jnp.dot(x, wqkv_ref[...],
                  preferred_element_type=jnp.float32) + bqkv_ref[...]   # (rows, 3D) f32

    # Slice q/k/v, fold the 1/sqrt(D) scale into q, cast MXU operands to bf16.
    q = (qkv[:, :d] * scale).reshape(tb, seq_len, d).astype(jnp.bfloat16)
    k = qkv[:, d:2 * d].reshape(tb, seq_len, d).astype(jnp.bfloat16)
    v = qkv[:, 2 * d:].reshape(tb, seq_len, d).astype(jnp.bfloat16)

    # scores[b] = q[b] @ k[b]^T, contracting the last axis of both (no k.T).
    scores = lax.dot_general(
        q, k,
        dimension_numbers=(((2,), (2,)), ((0,), (0,))),
        preferred_element_type=jnp.float32)               # (TB, S, S) f32

    # Numerically stable softmax in f32; approx reciprocal goes to the EUP.
    m = jnp.max(scores, axis=-1, keepdims=True)
    e = jnp.exp(scores - m)
    denom = jnp.sum(e, axis=-1, keepdims=True)
    attn = e * pl.reciprocal(denom, approx=True)          # (TB, S, S) f32

    # out[b] = attn[b] @ v[b]
    out = lax.dot_general(
        attn.astype(jnp.bfloat16), v,
        dimension_numbers=(((2,), (1,)), ((0,), (0,))),
        preferred_element_type=jnp.float32)               # (TB, S, D) f32

    # Final projection on the flattened slab (rows, D), f32 accumulation.
    out2 = out.reshape(rows, d).astype(jnp.bfloat16)
    y = jnp.dot(out2, wo_ref[...],
                preferred_element_type=jnp.float32) + bo_ref[...]       # (rows, D) f32

    o_ref[...] = y.astype(o_ref.dtype)


def prepare_params(params):
    """One-time parameter prep (outside jit): transpose nn.Linear weights to
    (in, out), fuse Wq|Wk|Wv into a single (D, 3D) weight, cast weights to
    bf16 for the MXU, keep biases in f32 for the VPU."""
    d = params["wq"].shape[0]
    wqkv = jnp.concatenate(
        [params["wq"].T, params["wk"].T, params["wv"].T], axis=1
    ).astype(jnp.bfloat16)                                  # (D, 3D)
    bqkv = jnp.concatenate(
        [params["bq"], params["bk"], params["bv"]]
    ).reshape(1, 3 * d).astype(jnp.float32)                 # (1, 3D)
    wo = params["wo"].T.astype(jnp.bfloat16)                # (D, D)
    bo = params["bo"].reshape(1, d).astype(jnp.float32)     # (1, D)
    return {"wqkv": wqkv, "bqkv": bqkv, "wo": wo, "bo": bo}


def _pick_tb(batch, seq):
    """Batch elements per grid step: pack enough rows to fill the MXU and
    amortize per-step pipeline overhead (targets >= 256 rows per step)."""
    target_rows = 256
    tb = 1
    for cand in range(1, batch + 1):
        if batch % cand == 0:
            tb = cand
            if cand * seq >= target_rows:
                break
    return tb


@jax.jit
def simple_transformer(x, prep):
    """x: (B, S, D) float32.  prep: output of prepare_params."""
    B, S, D = x.shape
    tb = _pick_tb(B, S)
    rows = tb * S

    # Flatten activations to a (B*S, D) slab (free reshape) and cast MXU
    # operand to bf16; output comes back as (B*S, D) f32 and is reshaped.
    x2 = x.reshape(B * S, D).astype(jnp.bfloat16)

    y2 = pl.pallas_call(
        functools.partial(_attn_kernel, S),
        out_shape=jax.ShapeDtypeStruct((B * S, D), x.dtype),
        grid_spec=pltpu.PrefetchScalarGridSpec(
            num_scalar_prefetch=0,
            grid=(B // tb,),
            in_specs=[
                pl.BlockSpec((rows, D), lambda b: (b, 0)),       # x rows
                pl.BlockSpec((D, 3 * D), lambda b: (0, 0)),      # Wqkv
                pl.BlockSpec((1, 3 * D), lambda b: (0, 0)),      # bqkv
                pl.BlockSpec((D, D), lambda b: (0, 0)),          # Wo
                pl.BlockSpec((1, D), lambda b: (0, 0)),          # bo
            ],
            out_specs=pl.BlockSpec((rows, D), lambda b: (b, 0)),
        ),
        compiler_params=pltpu.CompilerParams(
            dimension_semantics=("parallel",)),
    )(x2, prep["wqkv"], prep["bqkv"], prep["wo"], prep["bo"])

    return y2.reshape(B, S, D)


def _reference(x, params):
    """Pure-JAX f32 reference matching the PyTorch forward."""
    def linear(h, w, b):
        return h @ w.T + b
    q = linear(x, params["wq"], params["bq"])
    k = linear(x, params["wk"], params["bk"])
    v = linear(x, params["wv"], params["bv"])
    scores = jnp.einsum("bsd,btd->bst", q, k) / math.sqrt(x.shape[-1])
    attn = jax.nn.softmax(scores, axis=-1)
    out = jnp.einsum("bst,btd->bsd", attn, v)
    return linear(out, params["wo"], params["bo"])


if __name__ == "__main__":
    # Small shapes consistent with the module's forward: (batch, seq, d_model).
    B, S, D = 2, 8, 32

    key = jax.random.PRNGKey(0)
    keys = jax.random.split(key, 9)

    # nn.Linear-style parameter shapes: W (out, in), b (out,).
    bound = 1.0 / math.sqrt(D)
    params = {
        "wq": jax.random.uniform(keys[0], (D, D), jnp.float32, -bound, bound),
        "bq": jax.random.uniform(keys[1], (D,),   jnp.float32, -bound, bound),
        "wk": jax.random.uniform(keys[2], (D, D), jnp.float32, -bound, bound),
        "bk": jax.random.uniform(keys[3], (D,),   jnp.float32, -bound, bound),
        "wv": jax.random.uniform(keys[4], (D, D), jnp.float32, -bound, bound),
        "bv": jax.random.uniform(keys[5], (D,),   jnp.float32, -bound, bound),
        "wo": jax.random.uniform(keys[6], (D, D), jnp.float32, -bound, bound),
        "bo": jax.random.uniform(keys[7], (D,),   jnp.float32, -bound, bound),
    }
    x = jax.random.normal(keys[8], (B, S, D), jnp.float32)

    prep = prepare_params(params)          # one-time weight fusion / transpose
    y = jax.block_until_ready(simple_transformer(x, prep))

    y_ref = _reference(x, params)
    assert y.shape == (B, S, D)
    # bf16 MXU operands with f32 accumulation -> loose-but-bug-catching tolerance.
    assert jnp.allclose(y, y_ref, atol=5e-2, rtol=5e-2), (
        f"mismatch vs reference: max abs err {jnp.max(jnp.abs(y - y_ref))}")

    print("KERNEL_OK")
</pallas_src>

<mosaic_0001>
module attributes {stable_mosaic.version = 11 : i64} {
  func.func @_attn_kernel(%arg0: i32, %arg1: memref<16x32xbf16, #tpu.memory_space<vmem>>, %arg2: memref<32x96xbf16, #tpu.memory_space<vmem>>, %arg3: memref<1x96xf32, #tpu.memory_space<vmem>>, %arg4: memref<32x32xbf16, #tpu.memory_space<vmem>>, %arg5: memref<1x32xf32, #tpu.memory_space<vmem>>, %arg6: memref<16x32xf32, #tpu.memory_space<vmem>>) attributes {dimension_semantics = [#tpu.dimension_semantics<parallel>], iteration_bounds = array<i64: 1>, scalar_prefetch = 0 : i64, scratch_operands = 0 : i64, tpu.core_type = #tpu.core_type<tc>, window_params = [{transform_indices = @transform_0, window_bounds = array<i64: 16, 32>}, {pipeline_mode = #tpu.pipeline_mode<synchronous>, transform_indices = @transform_1, window_bounds = array<i64: 32, 96>}, {pipeline_mode = #tpu.pipeline_mode<synchronous>, transform_indices = @transform_2, window_bounds = array<i64: 1, 96>}, {pipeline_mode = #tpu.pipeline_mode<synchronous>, transform_indices = @transform_3, window_bounds = array<i64: 32, 32>}, {pipeline_mode = #tpu.pipeline_mode<synchronous>, transform_indices = @transform_4, window_bounds = array<i64: 1, 32>}, {transform_indices = @transform_5, window_bounds = array<i64: 16, 32>}]} {
    %c0 = arith.constant 0 : index
    %c0_0 = arith.constant 0 : index
    %0 = vector.load %arg1[%c0, %c0_0] : memref<16x32xbf16, #tpu.memory_space<vmem>>, vector<16x32xbf16>
    %c0_1 = arith.constant 0 : index
    %c0_2 = arith.constant 0 : index
    %1 = vector.load %arg2[%c0_1, %c0_2] : memref<32x96xbf16, #tpu.memory_space<vmem>>, vector<32x96xbf16>
    %cst = arith.constant dense<0.000000e+00> : vector<16x96xf32>
    %2 = tpu.matmul %0, %1, %cst {dimension_numbers = #tpu.dot_dimension_numbers<[1], [0], [0], [1], [0, 0, 1, 1], [], []>} : vector<16x32xbf16>, vector<32x96xbf16>, vector<16x96xf32> -> vector<16x96xf32>
    %c0_3 = arith.constant 0 : index
    %c0_4 = arith.constant 0 : index
    %3 = vector.load %arg3[%c0_3, %c0_4] : memref<1x96xf32, #tpu.memory_space<vmem>>, vector<1x96xf32>
    %4 = vector.broadcast %3 : vector<1x96xf32> to vector<16x96xf32>
    %5 = arith.addf %2, %4 : vector<16x96xf32>
    %6 = vector.extract_strided_slice %5 {offsets = [0, 0], sizes = [16, 32], strides = [1, 1]} : vector<16x96xf32> to vector<16x32xf32>
    %cst_5 = arith.constant 0.176776692 : f32
    %7 = vector.broadcast %cst_5 : f32 to vector<16x32xf32>
    %8 = arith.mulf %6, %7 : vector<16x32xf32>
    %9 = vector.shape_cast %8 : vector<16x32xf32> to vector<2x8x32xf32>
    %10 = arith.truncf %9 : vector<2x8x32xf32> to vector<2x8x32xbf16>
    %11 = vector.extract_strided_slice %5 {offsets = [0, 32], sizes = [16, 32], strides = [1, 1]} : vector<16x96xf32> to vector<16x32xf32>
    %12 = vector.shape_cast %11 : vector<16x32xf32> to vector<2x8x32xf32>
    %13 = arith.truncf %12 : vector<2x8x32xf32> to vector<2x8x32xbf16>
    %14 = vector.extract_strided_slice %5 {offsets = [0, 64], sizes = [16, 32], strides = [1, 1]} : vector<16x96xf32> to vector<16x32xf32>
    %15 = vector.shape_cast %14 : vector<16x32xf32> to vector<2x8x32xf32>
    %16 = arith.truncf %15 : vector<2x8x32xf32> to vector<2x8x32xbf16>
    %cst_6 = arith.constant dense<0.000000e+00> : vector<2x8x8xf32>
    %17 = tpu.matmul %10, %13, %cst_6 {dimension_numbers = #tpu.dot_dimension_numbers<[2], [2], [1], [1], [0, 0, 0, 1, 1, 1], [0], [0]>} : vector<2x8x32xbf16>, vector<2x8x32xbf16>, vector<2x8x8xf32> -> vector<2x8x8xf32>
    %cst_7 = arith.constant dense<0xFF800000> : vector<2x8xf32>
    %18 = vector.multi_reduction <maximumf>, %17, %cst_7 [2] : vector<2x8x8xf32> to vector<2x8xf32>
    %19 = vector.shape_cast %18 : vector<2x8xf32> to vector<2x8x1xf32>
    %20 = vector.broadcast %19 : vector<2x8x1xf32> to vector<2x8x8xf32>
    %21 = arith.subf %17, %20 : vector<2x8x8xf32>
    %22 = math.exp %21 : vector<2x8x8xf32>
    %cst_8 = arith.constant dense<0.000000e+00> : vector<2x8xf32>
    %23 = vector.multi_reduction <add>, %22, %cst_8 [2] : vector<2x8x8xf32> to vector<2x8xf32>
    %24 = vector.shape_cast %23 : vector<2x8xf32> to vector<2x8x1xf32>
    %25 = tpu.reciprocal %24 {approx = true} : vector<2x8x1xf32> -> vector<2x8x1xf32>
    %26 = vector.broadcast %25 : vector<2x8x1xf32> to vector<2x8x8xf32>
    %27 = arith.mulf %22, %26 : vector<2x8x8xf32>
    %28 = arith.truncf %27 : vector<2x8x8xf32> to vector<2x8x8xbf16>
    %cst_9 = arith.constant dense<0.000000e+00> : vector<2x8x32xf32>
    %29 = tpu.matmul %28, %16, %cst_9 {dimension_numbers = #tpu.dot_dimension_numbers<[2], [1], [1], [2], [0, 0, 0, 1, 1, 2], [0], [0]>} : vector<2x8x8xbf16>, vector<2x8x32xbf16>, vector<2x8x32xf32> -> vector<2x8x32xf32>
    %30 = vector.shape_cast %29 : vector<2x8x32xf32> to vector<16x32xf32>
    %31 = arith.truncf %30 : vector<16x32xf32> to vector<16x32xbf16>
    %c0_10 = arith.constant 0 : index
    %c0_11 = arith.constant 0 : index
    %32 = vector.load %arg4[%c0_10, %c0_11] : memref<32x32xbf16, #tpu.memory_space<vmem>>, vector<32x32xbf16>
    %cst_12 = arith.constant dense<0.000000e+00> : vector<16x32xf32>
    %33 = tpu.matmul %31, %32, %cst_12 {dimension_numbers = #tpu.dot_dimension_numbers<[1], [0], [0], [1], [0, 0, 1, 1], [], []>} : vector<16x32xbf16>, vector<32x32xbf16>, vector<16x32xf32> -> vector<16x32xf32>
    %c0_13 = arith.constant 0 : index
    %c0_14 = arith.constant 0 : index
    %34 = vector.load %arg5[%c0_13, %c0_14] : memref<1x32xf32, #tpu.memory_space<vmem>>, vector<1x32xf32>
    %35 = vector.broadcast %34 : vector<1x32xf32> to vector<16x32xf32>
    %36 = arith.addf %33, %35 : vector<16x32xf32>
    %c0_15 = arith.constant 0 : index
    %c0_16 = arith.constant 0 : index
    %37 = vector.load %arg6[%c0_15, %c0_16] : memref<16x32xf32, #tpu.memory_space<vmem>>, vector<16x32xf32>
    tpu.vector_store %arg6[%c0_15, %c0_16], %36 {strides = array<i32>} : memref<16x32xf32, #tpu.memory_space<vmem>>, vector<16x32xf32>,
    return
  }
  func.func @transform_0(%arg0: i32) -> (i32, i32) {
    %c0_i32 = arith.constant 0 : i32
    %c0_i32_0 = arith.constant 0 : i32
    return %arg0, %c0_i32 : i32, i32
  }
  func.func @transform_1(%arg0: i32) -> (i32, i32) {
    %c0_i32 = arith.constant 0 : i32
    %c0_i32_0 = arith.constant 0 : i32
    %c0_i32_1 = arith.constant 0 : i32
    return %c0_i32, %c0_i32_0 : i32, i32
  }
  func.func @transform_2(%arg0: i32) -> (i32, i32) {
    %c0_i32 = arith.constant 0 : i32
    %c0_i32_0 = arith.constant 0 : i32
    %c0_i32_1 = arith.constant 0 : i32
    return %c0_i32, %c0_i32_0 : i32, i32
  }
  func.func @transform_3(%arg0: i32) -> (i32, i32) {
    %c0_i32 = arith.constant 0 : i32
    %c0_i32_0 = arith.constant 0 : i32
    %c0_i32_1 = arith.constant 0 : i32
    return %c0_i32, %c0_i32_0 : i32, i32
  }
  func.func @transform_4(%arg0: i32) -> (i32, i32) {
    %c0_i32 = arith.constant 0 : i32
    %c0_i32_0 = arith.constant 0 : i32
    %c0_i32_1 = arith.constant 0 : i32
    return %c0_i32, %c0_i32_0 : i32, i32
  }
  func.func @transform_5(%arg0: i32) -> (i32, i32) {
    %c0_i32 = arith.constant 0 : i32
    %c0_i32_0 = arith.constant 0 : i32
    return %arg0, %c0_i32 : i32, i32
  }
}

</mosaic_0001>

<bundles_post_ra>
// kernel: simple_transformer.1
= control target key start
LH: loop header
LB: loop body
LE: loop exit
PB: predicated region body
PF: predicated region fallthrough
CT: control target
= control target key end

     0   :  { %10 = vsyncpa [#allocation3], 0  ;;  %s440_s0 = inlined_call_operand.vmem [shape: bf16[16,32], index: 0, kind: input, shape index: {}]   ;;  %s441_s1 = inlined_call_operand.vmem [shape: bf16[32,96], index: 1, kind: input, shape index: {}]   ;;  %s442_s2 = inlined_call_operand.vmem [shape: f32[1,96], index: 2, kind: input, shape index: {}]   ;;  %s443_s3 = inlined_call_operand.hbm [shape: bf16[32,32], index: 3, kind: input, shape index: {}]   ;;  %s444_s4 = inlined_call_operand.vmem [shape: f32[1,32], index: 4, kind: input, shape index: {}]   ;;  %s445_s5 = inlined_call_operand.hbm [shape: f32[16,32], index: 5, kind: output, shape index: {}]  }
   0x1   :  { %11 = vsyncpa [#allocation4], 0  ;;  %s22_s20 = sshll.u32 %s443_s3, 4  ;;  %s364_s21 = smov [#allocation2]   ;;  %s23_s20 = int_to_ptr.hbm [resolvable:$true] %s22_s20 }
   0x2   :  { %s24_s22 = sshll.u32 %s364_s21, 4  ;;  %s365_s23 = smov 64   ;;  %s25_s22 = int_to_ptr.vmem [resolvable:$true] %s24_s22 }
   0x3   :  { %s366_s24 = smov 4  }
   0x4   :  { %30 = dma.hbm_to_vmem [thread:$0]  %s23_s20, 256, %s25_s22, [#allocation3], %s365_s23, %s365_s23, %s366_s24  }
   0x5   :  { %360 = dma.done.wait [#allocation3], 256  }
   0x6   :  { %361 = vsyncadd [#allocation3], 4294967040  ;;  %v292_v0 = vld [vmem:[%s441_s1 + $0x8] sm:$0xff]  ;;  %v291_v1 = vld [vmem:[%s441_s1] sm:$0xff]  ;;  %vm65_vm0 = vcmask 261120   ;;  %s367_s1 = smov 96  }
   0x7   :  { %75 = vmatpush.bf16.msra.mxu0 %v292_v0  ;;  %v290_v2 = vld [vmem:[%s440_s0] sm:$0xff]  ;;  %vm137_vm1 = vcmask 64512   ;;  %vm167_vm2 = vcmask 1043456   ;;  %v294_v50 = vld [vmem:[#allocation2 + $0x8] sm:$0xff]  ;;  %s368_s7 = smov [#allocation5]   ;;  %s251_s11 = sshll.u32 %s445_s5, 4  ;;  %s252_s11 = int_to_ptr.hbm [resolvable:$true] %s251_s11 }
   0x8   :  { %v302_v3 = vld [vmem:[%s442_s2] ss:$0 sm:$0xff]  ;;  %s249_s8 = sshll.u32 %s368_s7, 4  ;;  %s369_s12 = smov 128   ;;  %s250_s8 = int_to_ptr.vmem [resolvable:$true] %s249_s8 }
   0x9   :  { %v293_v51 = vld [vmem:[#allocation2] sm:$0xff]  ;;  %s370_s13 = smov 8  }
   0xa   :  { %v303_v57 = vld [vmem:[%s444_s4] ss:$0 sm:$0xff] }
   0xb   :  { %76 = vmatpush.bf16.msra.mxu0 %v291_v1 }
   0xe   :  { %276 = vmatmul.msk.bf16.vlgmr.msra.gmra.mxu0 %vm65_vm0, %v290_v2 }
   0xf   :  { %235 = vmatpush.bf16.msrb.mxu0 %v294_v50 }
  0x13   :  { %236 = vmatpush.bf16.msrb.mxu0 %v293_v51 }
  0x8b   :  { %v78_v4 = vpop.f32.mrf.mxu0 }
  0x8c   :  { %v79_v5 = vadd.f32 %v302_v3, %v78_v4 }
  0x8e   :  { %v87_v6 = vpack.c.bf16 %v79_v5, %v79_v5  ;;  %v83_v16 = vmul.f32 0.17677669, %v79_v5 }
  0x90   :  { %v90_v7 = vunpack.c.l.b16 %v87_v6  ;;  %v85_v17 = vpack.c.bf16 %v83_v16, %v83_v16 }
  0x92   :  { %v91_v8 = vpack.c.b16 %v90_v7, %v90_v7 }
  0x93   :  { %v80_v9 = vpop.f32.mrf.mxu0 }
  0x94   :  { %v81_v10 = vadd.f32 %v302_v3, %v80_v9  ;;  %92 = vrot.lane.b32.xlu0 %v91_v8, %s367_s1 }
  0x96   :  { %v88_v11 = vpack.c.bf16 %v81_v10, %v81_v10  ;;  %v84_v20 = vmul.f32 0.17677669, %v81_v10 }
  0x98   :  { %v114_v12 = vunpack.c.l.b16 %v88_v11  ;;  %v86_v21 = vpack.c.bf16 %v84_v20, %v84_v20 }
  0x9a   :  { %v115_v13 = vpack.c.b16 %v114_v12, %v114_v12 }
  0x9c   :  { %116 = vrot.lane.b32.xlu0 %v115_v13, %s367_s1 }
 0x106   :  { %v93_v14 = vpop.permute.xlu0 %92 }
 0x107   :  { %v98_v15 = vsel %vm65_vm0, %v93_v14, 0 }
 0x108   :  { %107 = vmatpush.bf16.xpose.msra.mxu1 %v98_v15 }
 0x10e   :  { %v117_v18 = vpop.permute.xlu0 %116 }
 0x10f   :  { %277 = vmatmul.msk.bf16.vlgmr.msra.gmra.mxu1 %vm65_vm0, %v85_v17  ;;  %v122_v19 = vsel %vm65_vm0, %v117_v18, 0 }
 0x110   :  { %131 = vmatpush.bf16.xpose.msra.mxu2 %v122_v19 }
 0x117   :  { %278 = vmatmul.msk.bf16.vlgmr.msra.gmra.mxu2 %vm65_vm0, %v86_v21 }
 0x18c   :  { %v109_v22 = vpop.f32.mrf.mxu1 }
 0x18d   :  { %v138_v23 = vsel %vm137_vm1, %v109_v22, -inf }
 0x18e   :  { %139 = vmax.xlane.f32.xlu1 %v138_v23 }
 0x194   :  { %v111_v24 = vpop.f32.mrf.mxu1 }
 0x19a   :  { %v133_v25 = vpop.f32.mrf.mxu2 }
 0x19b   :  { %v141_v26 = vsel %vm137_vm1, %v133_v25, -inf }
 0x19c   :  { %142 = vmax.xlane.f32.xlu1 %v141_v26 }
 0x1a2   :  { %v135_v27 = vpop.f32.mrf.mxu2 }
 0x1b5   :  { %184 = vrot.lane.b32.xlu1 %v115_v13, %s365_s23 }
 0x201   :  { %v140_v28 = vpop.xlane.xlu1 %139 }
 0x202   :  { %v144_v29 = vsub.f32 %v109_v22, %v140_v28 }
 0x204   :  { %v146_v30 = vmul.f32 1.442695, %v144_v29 }
 0x206   :  { %304 = vpow2.f32 %v146_v30 }
 0x20c   :  { %v305_v31 = vpop.eup %304 }
 0x20d   :  { %v150_v32 = vsel %vm137_vm1, %v305_v31, 0.0 }
 0x20e   :  { %151 = vadd.xlane.f32.xlu2 %v150_v32 }
 0x20f   :  { %v143_v33 = vpop.xlane.xlu1 %142 }
 0x210   :  { %v145_v34 = vsub.f32 %v133_v25, %v143_v33 }
 0x212   :  { %v148_v35 = vmul.f32 1.442695, %v145_v34 }
 0x214   :  { %306 = vpow2.f32 %v148_v35 }
 0x21a   :  { %v307_v36 = vpop.eup %306 }
 0x21b   :  { %v153_v37 = vsel %vm137_vm1, %v307_v36, 0.0 }
 0x21c   :  { %154 = vadd.xlane.f32.xlu0 %v153_v37 }
 0x226   :  { %162 = vrot.lane.b32.xlu2 %v91_v8, %s365_s23 }
 0x227   :  { %v185_v40 = vpop.permute.xlu1 %184 }
 0x228   :  { %v190_v44 = vsel %vm167_vm2, %v185_v40, 0 }
 0x281   :  { %v152_v38 = vpop.xlane.xlu2 %151 }
 0x282   :  { %308 = vrcp.f32 %v152_v38 }
 0x288   :  { %v309_v39 = vpop.eup %308 }
 0x289   :  { %v163_v41 = vpop.permute.xlu2 %162  ;;  %v158_v42 = vmul.f32 %v309_v39, %v305_v31 }
 0x28a   :  { %v169_v43 = vsel %vm167_vm2, %v163_v41, 0 }
 0x28b   :  { %178 = vmatpush.bf16.msra.mxu3 %v169_v43  ;;  %v160_v45 = vpack.c.bf16 %v158_v42, %v158_v42 }
 0x28e   :  { %279 = vmatmul.msk.bf16.vlgmr.msra.gmra.mxu3 %vm137_vm1, %v160_v45 }
 0x28f   :  { %199 = vmatpush.bf16.msrb.mxu3 %v190_v44  ;;  %v155_v46 = vpop.xlane.xlu0 %154 }
 0x290   :  { %310 = vrcp.f32 %v155_v46 }
 0x296   :  { %v311_v47 = vpop.eup %310 }
 0x297   :  { %v159_v48 = vmul.f32 %v311_v47, %v307_v36 }
 0x299   :  { %v161_v49 = vpack.c.bf16 %v159_v48, %v159_v48 }
 0x29e   :  { %280 = vmatmul.msk.bf16.vlgmr.msrb.gmra.mxu3 %vm137_vm1, %v161_v49 }
 0x311   :  { %v180_v52 = vpop.f32.mrf.mxu3 }
 0x319   :  { %v182_v53 = vpop.f32.mrf.mxu3 }
 0x321   :  { %v201_v54 = vpop.f32.mrf.mxu3 }
 0x322   :  { %v205_v55 = vpack.c.bf16 %v201_v54, %v180_v52 }
 0x324   :  { %289 = vmatmul.msk.bf16.vlgmr.msrb.gmra.mxu0 %vm65_vm0, %v205_v55 }
 0x329   :  { %v203_v56 = vpop.f32.mrf.mxu3 }
 0x3a1   :  { %v238_v58 = vpop.f32.mrf.mxu0 }
 0x3a2   :  { %v239_v59 = vadd.f32 %v303_v57, %v238_v58 }
 0x3a4   :  { %243 = vst.msk [vmem:[#allocation5] sm:$0xff] %vm65_vm0, %v239_v59 }
 0x3a9   :  { %v240_v60 = vpop.f32.mrf.mxu0 }
 0x3aa   :  { %v241_v61 = vadd.f32 %v303_v57, %v240_v60 }
 0x3ac   :  { %244 = vst.msk [vmem:[#allocation5 + $0x8] sm:$0xff] %vm65_vm0, %v241_v61 }
 0x3ad   :  { %257 = dma.vmem_to_hbm [thread:$0]  %s250_s8, 256, %s252_s11, [#allocation4], %s369_s12, %s369_s12, %s370_s13  }
 0x3ae   :  { %362 = dma.done.wait [#allocation4], 256  }
 0x3af   :  { %363 = vsyncadd [#allocation4], 4294967040 }
 0x3b0   :  { %262 = vsyncpa [#allocation3], 1 }
 0x3b1   :  { %263 = vsyncpa [#allocation4], 1 }

</bundles_post_ra>
